<compile_context>
chip_gen: v6e
topology: v6e:2x2x1
jax: 0.10.0
libtpu: 0.0.40
codegen_flags: <defaults>
</compile_context>

<pallas_src>
import functools

import jax
import jax.numpy as jnp
from jax.experimental import pallas as pl
from jax.experimental.pallas import tpu as pltpu


def _round_up(x, m):
    return (x + m - 1) // m * m


def _vmem_budget_bytes():
    # Generation-aware VMEM cap: v5e/v6e have 128 MiB physical, v7x only 64 MiB.
    try:
        cap = pltpu.get_tpu_info().vmem_capacity_bytes
    except Exception:
        cap = 64 * 1024 * 1024          # conservative (v7x-sized) fallback
    return min(cap // 2, 48 * 1024 * 1024)


def _is_v5e():
    try:
        kind = jax.devices()[0].device_kind.lower()
        return ("v5 lite" in kind) or ("v5e" in kind) or ("v5litepod" in kind)
    except Exception:
        return False


def _pick_tm(M, K):
    """Row-tile size.

    * Large tiles (<=1024 rows) for the small-K conv matmuls, 256 for big-K fc.
    * >= 2 row blocks whenever M allows, so both v7x TensorCores get work even
      when there is a single column block.
    * Multiple of 16 (bf16 sublane packing); falls back to the full dim for
      tiny M (full-dim blocks are always legal).
    """
    cap = 1024 if K <= 1024 else 256
    tm = min(cap, _round_up(pl.cdiv(M, 2), 16))
    if tm >= M:
        return M
    return tm


# ---------------------------------------------------------------------------
# Fused matmul + bias + (optional) ReLU Pallas kernel  (full-K per tile)
# ---------------------------------------------------------------------------
def _matmul_bias_act_kernel(a_ref, w_ref, b_ref, o_ref, *, relu):
    y = jnp.dot(a_ref[...], w_ref[...], preferred_element_type=jnp.float32)
    y = y + b_ref[...]                       # bias broadcast over rows (f32)
    if relu:
        y = jnp.maximum(y, 0.0)
    o_ref[...] = y.astype(o_ref.dtype)


def matmul_bias_act(a, w, b, *, relu, out_dtype):
    """act(a @ w + b).  a:[M,K] (cast bf16), w:[K,N] bf16, b:[1,N] f32."""
    M, K = a.shape
    K2, N = w.shape
    assert K == K2 and b.shape == (1, N), (a.shape, w.shape, b.shape)
    if a.dtype != jnp.bfloat16:
        a = a.astype(jnp.bfloat16)

    tm = _pick_tm(M, K)
    # Column tile: full N when N is small / unaligned (no weight padding, no
    # output slice copy, full-dim blocks are legal); 256-wide on the 256x256
    # MXU parts (v6e/v7x), 128 on v5e.
    if N % 128 != 0 or N <= 128:
        tn = N
    elif N % 256 == 0 and not _is_v5e():
        tn = 256
    else:
        tn = 128

    grid = (pl.cdiv(M, tm), pl.cdiv(N, tn))

    out_bytes = jnp.dtype(out_dtype).itemsize
    tile_bytes = tm * K * 2 + K * tn * 2 + tn * 4 + tm * tn * out_bytes
    needed = 2 * tile_bytes                   # double-buffered
    budget = _vmem_budget_bytes()
    # TODO(synk): add a K-tiled accumulator fallback if K ever grows enough to
    #             break this budget (unreachable here: K <= 3136).
    assert needed <= budget, ("full-K tile too large for VMEM", needed, budget)
    vmem_limit = min(budget, max(2 * needed, 32 * 1024 * 1024))

    return pl.pallas_call(
        functools.partial(_matmul_bias_act_kernel, relu=relu),
        out_shape=jax.ShapeDtypeStruct((M, N), out_dtype),
        grid=grid,
        in_specs=[
            pl.BlockSpec((tm, K), lambda i, j: (i, 0)),
            pl.BlockSpec((K, tn), lambda i, j: (0, j)),
            pl.BlockSpec((1, tn), lambda i, j: (0, j)),
        ],
        out_specs=pl.BlockSpec((tm, tn), lambda i, j: (i, j)),
        compiler_params=pltpu.CompilerParams(
            dimension_semantics=("parallel", "parallel"),
            vmem_limit_bytes=vmem_limit,
        ),
    )(a, w, b)


# ---------------------------------------------------------------------------
# Fused fc1+fc2 kernel:  q = relu(x @ W1 + b1) @ W2 + b2   per M tile
# ---------------------------------------------------------------------------
def _fused_fc_kernel(x_ref, w1_ref, b1_ref, w2_ref, b2_ref, o_ref):
    h = jnp.dot(x_ref[...], w1_ref[...], preferred_element_type=jnp.float32)
    h = jnp.maximum(h + b1_ref[...], 0.0).astype(jnp.bfloat16)
    q = jnp.dot(h, w2_ref[...], preferred_element_type=jnp.float32)
    o_ref[...] = (q + b2_ref[...]).astype(o_ref.dtype)


def fused_fc(x, w1, b1, w2, b2):
    M, K = x.shape
    K2, H = w1.shape
    H2, N = w2.shape
    assert K == K2 and H == H2 and b1.shape == (1, H) and b2.shape == (1, N)
    if x.dtype != jnp.bfloat16:
        x = x.astype(jnp.bfloat16)

    tm = _pick_tm(M, K)
    grid = (pl.cdiv(M, tm),)

    tile_bytes = (tm * K * 2 + K * H * 2 + H * 4 + H * N * 2 + N * 4
                  + tm * H * 4 + tm * N * 4)      # incl. f32 intermediate spill
    needed = 2 * tile_bytes
    budget = _vmem_budget_bytes()
    assert needed <= budget, ("fused fc tile too large for VMEM", needed, budget)
    vmem_limit = min(budget, max(2 * needed, 32 * 1024 * 1024))

    return pl.pallas_call(
        _fused_fc_kernel,
        out_shape=jax.ShapeDtypeStruct((M, N), jnp.float32),
        grid=grid,
        in_specs=[
            pl.BlockSpec((tm, K), lambda i: (i, 0)),
            pl.BlockSpec((K, H), lambda i: (0, 0)),
            pl.BlockSpec((1, H), lambda i: (0, 0)),
            pl.BlockSpec((H, N), lambda i: (0, 0)),
            pl.BlockSpec((1, N), lambda i: (0, 0)),
        ],
        out_specs=pl.BlockSpec((tm, N), lambda i: (i, 0)),
        compiler_params=pltpu.CompilerParams(
            dimension_semantics=("parallel",),
            vmem_limit_bytes=vmem_limit,
        ),
    )(x, w1, b1, w2, b2)


# ---------------------------------------------------------------------------
# im2col glue (plain JAX, bf16) on NHWC — feature order (kh, kw, C)
# ---------------------------------------------------------------------------
def im2col_nhwc(x, kh, kw, stride):
    n, h, w, c = x.shape
    oh = (h - kh) // stride + 1
    ow = (w - kw) // stride + 1
    cols = []
    for i in range(kh):
        for j in range(kw):
            cols.append(x[:, i:i + stride * oh:stride, j:j + stride * ow:stride, :])
    patches = jnp.stack(cols, axis=3)                 # (n, oh, ow, kh*kw, c)
    return patches.reshape(n * oh * ow, kh * kw * c), oh, ow


def conv2d_relu_nhwc(x, w_mat, bias, kh, kw, stride):
    """x: NHWC bf16. w_mat: [kh*kw*in_c, out_c] bf16. Returns NHWC bf16."""
    n = x.shape[0]
    patches, oh, ow = im2col_nhwc(x, kh, kw, stride)
    y = matmul_bias_act(patches, w_mat, bias, relu=True, out_dtype=jnp.bfloat16)
    return y.reshape(n, oh, ow, w_mat.shape[1])


# ---------------------------------------------------------------------------
# QNetwork parameters (PyTorch layout) + one-time kernel re-layout + forward
# ---------------------------------------------------------------------------
def conv2d_size_out(size, kernel_size, stride):
    return (size - (kernel_size - 1) - 1) // stride + 1


def init_qnetwork_params(key, input_shape, num_actions):
    """Parameters in PyTorch layout: conv (out,in,kh,kw); fc (out,in), NCHW flatten."""
    c, h, w = input_shape
    convw = conv2d_size_out(conv2d_size_out(conv2d_size_out(w, 8, 4), 4, 2), 3, 1)
    convh = conv2d_size_out(conv2d_size_out(conv2d_size_out(h, 8, 4), 4, 2), 3, 1)
    linear_input_size = convw * convh * 64

    keys = jax.random.split(key, 10)
    return {
        "conv1_w": jax.random.normal(keys[0], (32, c, 8, 8), jnp.float32) * 0.05,
        "conv1_b": jax.random.normal(keys[1], (32,), jnp.float32) * 0.05,
        "conv2_w": jax.random.normal(keys[2], (64, 32, 4, 4), jnp.float32) * 0.05,
        "conv2_b": jax.random.normal(keys[3], (64,), jnp.float32) * 0.05,
        "conv3_w": jax.random.normal(keys[4], (64, 64, 3, 3), jnp.float32) * 0.05,
        "conv3_b": jax.random.normal(keys[5], (64,), jnp.float32) * 0.05,
        "fc1_w": jax.random.normal(keys[6], (512, linear_input_size), jnp.float32) * 0.05,
        "fc1_b": jax.random.normal(keys[7], (512,), jnp.float32) * 0.05,
        "fc2_w": jax.random.normal(keys[8], (num_actions, 512), jnp.float32) * 0.05,
        "fc2_b": jax.random.normal(keys[9], (num_actions,), jnp.float32) * 0.05,
    }


def _conv_w_to_mat(w):
    # (out_c, in_c, kh, kw) -> [kh*kw*in_c, out_c] (matches NHWC im2col order).
    out_c, in_c, kh, kw = w.shape
    return w.transpose(2, 3, 1, 0).reshape(kh * kw * in_c, out_c)


def prepare_params(params, input_shape):
    """One-time re-layout of PyTorch-style params for the NHWC/bf16 kernels."""
    c, h, w = input_shape
    convw = conv2d_size_out(conv2d_size_out(conv2d_size_out(w, 8, 4), 4, 2), 3, 1)
    convh = conv2d_size_out(conv2d_size_out(conv2d_size_out(h, 8, 4), 4, 2), 3, 1)

    # fc1 consumes the NHWC flatten (h, w, c) of the conv output; permute its
    # PyTorch NCHW-ordered input axis to match, and store pre-transposed [K, N].
    fc1_w = params["fc1_w"].reshape(512, 64, convh, convw)
    fc1_w = fc1_w.transpose(0, 2, 3, 1).reshape(512, convh * convw * 64).T

    def bias(v):
        return v.astype(jnp.float32).reshape(1, -1)

    return {
        # /255 input scaling folded into conv1's weight (bias untouched).
        "conv1_w": (_conv_w_to_mat(params["conv1_w"]) / 255.0).astype(jnp.bfloat16),
        "conv1_b": bias(params["conv1_b"]),
        "conv2_w": _conv_w_to_mat(params["conv2_w"]).astype(jnp.bfloat16),
        "conv2_b": bias(params["conv2_b"]),
        "conv3_w": _conv_w_to_mat(params["conv3_w"]).astype(jnp.bfloat16),
        "conv3_b": bias(params["conv3_b"]),
        "fc1_w": fc1_w.astype(jnp.bfloat16),
        "fc1_b": bias(params["fc1_b"]),
        "fc2_w": params["fc2_w"].T.astype(jnp.bfloat16),
        "fc2_b": bias(params["fc2_b"]),
    }


def qnetwork_forward(prepared, x):
    """x: NCHW float32 in [0, 255]. Same math as QNetwork.forward (bf16 activations)."""
    n = x.shape[0]
    # Single NCHW -> NHWC relayout + bf16 cast; activations stay NHWC bf16
    # through the conv stack ([0,255] integer pixels are exact in bf16).
    x = x.astype(jnp.bfloat16).transpose(0, 2, 3, 1)
    x = conv2d_relu_nhwc(x, prepared["conv1_w"], prepared["conv1_b"], 8, 8, 4)
    x = conv2d_relu_nhwc(x, prepared["conv2_w"], prepared["conv2_b"], 4, 4, 2)
    x = conv2d_relu_nhwc(x, prepared["conv3_w"], prepared["conv3_b"], 3, 3, 1)
    x = x.reshape(n, -1)        # NHWC flatten; fc1_w rows are permuted to match
    return fused_fc(x, prepared["fc1_w"], prepared["fc1_b"],
                    prepared["fc2_w"], prepared["fc2_b"])


if __name__ == "__main__":
    # Smallest spatial size that survives the 8/4 -> 4/2 -> 3/1 conv stack:
    # 36 -> 8 -> 3 -> 1, so linear_input_size = 64.
    batch, c, h, w = 2, 4, 36, 36
    num_actions = 6

    key = jax.random.PRNGKey(0)
    pkey, xkey = jax.random.split(key)
    params = init_qnetwork_params(pkey, (c, h, w), num_actions)
    prepared = prepare_params(params, (c, h, w))
    x = jax.random.uniform(xkey, (batch, c, h, w), jnp.float32, 0.0, 255.0)

    fwd = jax.jit(qnetwork_forward)
    q_values = jax.block_until_ready(fwd(prepared, x))
    assert q_values.shape == (batch, num_actions), q_values.shape
    assert q_values.dtype == jnp.float32
    assert bool(jnp.all(jnp.isfinite(q_values)))
    print("KERNEL_OK")
</pallas_src>

<mosaic_0001>
module attributes {stable_mosaic.version = 11 : i64} {
  func.func @_matmul_bias_act_kernel(%arg0: i32, %arg1: i32, %arg2: memref<64x256xbf16, #tpu.memory_space<vmem>>, %arg3: memref<256x32xbf16, #tpu.memory_space<vmem>>, %arg4: memref<1x32xf32, #tpu.memory_space<vmem>>, %arg5: memref<64x32xbf16, #tpu.memory_space<vmem>>) attributes {dimension_semantics = [#tpu.dimension_semantics<parallel>, #tpu.dimension_semantics<parallel>], iteration_bounds = array<i64: 2, 1>, scalar_prefetch = 0 : i64, scratch_operands = 0 : i64, tpu.core_type = #tpu.core_type<tc>, window_params = [{transform_indices = @transform_0, window_bounds = array<i64: 64, 256>}, {transform_indices = @transform_1, window_bounds = array<i64: 256, 32>}, {transform_indices = @transform_2, window_bounds = array<i64: 1, 32>}, {transform_indices = @transform_3, window_bounds = array<i64: 64, 32>}]} {
    %c0 = arith.constant 0 : index
    %c0_0 = arith.constant 0 : index
    %0 = vector.load %arg2[%c0, %c0_0] : memref<64x256xbf16, #tpu.memory_space<vmem>>, vector<64x256xbf16>
    %c0_1 = arith.constant 0 : index
    %c0_2 = arith.constant 0 : index
    %1 = vector.load %arg3[%c0_1, %c0_2] : memref<256x32xbf16, #tpu.memory_space<vmem>>, vector<256x32xbf16>
    %cst = arith.constant dense<0.000000e+00> : vector<64x32xf32>
    %2 = tpu.matmul %0, %1, %cst {dimension_numbers = #tpu.dot_dimension_numbers<[1], [0], [0], [1], [0, 0, 1, 1], [], []>} : vector<64x256xbf16>, vector<256x32xbf16>, vector<64x32xf32> -> vector<64x32xf32>
    %c0_3 = arith.constant 0 : index
    %c0_4 = arith.constant 0 : index
    %3 = vector.load %arg4[%c0_3, %c0_4] : memref<1x32xf32, #tpu.memory_space<vmem>>, vector<1x32xf32>
    %4 = vector.broadcast %3 : vector<1x32xf32> to vector<64x32xf32>
    %5 = arith.addf %2, %4 : vector<64x32xf32>
    %cst_5 = arith.constant 0.000000e+00 : f32
    %6 = vector.broadcast %cst_5 : f32 to vector<64x32xf32>
    %7 = arith.maximumf %5, %6 : vector<64x32xf32>
    %8 = arith.truncf %7 : vector<64x32xf32> to vector<64x32xbf16>
    %c0_6 = arith.constant 0 : index
    %c0_7 = arith.constant 0 : index
    %9 = vector.load %arg5[%c0_6, %c0_7] : memref<64x32xbf16, #tpu.memory_space<vmem>>, vector<64x32xbf16>
    tpu.vector_store %arg5[%c0_6, %c0_7], %8 {strides = array<i32>} : memref<64x32xbf16, #tpu.memory_space<vmem>>, vector<64x32xbf16>,
    return
  }
  func.func @transform_0(%arg0: i32, %arg1: i32) -> (i32, i32) {
    %c0_i32 = arith.constant 0 : i32
    %c0_i32_0 = arith.constant 0 : i32
    return %arg0, %c0_i32 : i32, i32
  }
  func.func @transform_1(%arg0: i32, %arg1: i32) -> (i32, i32) {
    %c0_i32 = arith.constant 0 : i32
    %c0_i32_0 = arith.constant 0 : i32
    return %c0_i32, %arg1 : i32, i32
  }
  func.func @transform_2(%arg0: i32, %arg1: i32) -> (i32, i32) {
    %c0_i32 = arith.constant 0 : i32
    %c0_i32_0 = arith.constant 0 : i32
    return %c0_i32, %arg1 : i32, i32
  }
  func.func @transform_3(%arg0: i32, %arg1: i32) -> (i32, i32) {
    %c0_i32 = arith.constant 0 : i32
    return %arg0, %arg1 : i32, i32
  }
}

module attributes {stable_mosaic.version = 11 : i64} {
  func.func @_matmul_bias_act_kernel(%arg0: i32, %arg1: i32, %arg2: memref<16x512xbf16, #tpu.memory_space<vmem>>, %arg3: memref<512x64xbf16, #tpu.memory_space<vmem>>, %arg4: memref<1x64xf32, #tpu.memory_space<vmem>>, %arg5: memref<16x64xbf16, #tpu.memory_space<vmem>>) attributes {dimension_semantics = [#tpu.dimension_semantics<parallel>, #tpu.dimension_semantics<parallel>], iteration_bounds = array<i64: 2, 1>, scalar_prefetch = 0 : i64, scratch_operands = 0 : i64, tpu.core_type = #tpu.core_type<tc>, window_params = [{transform_indices = @transform_0, window_bounds = array<i64: 16, 512>}, {transform_indices = @transform_1, window_bounds = array<i64: 512, 64>}, {transform_indices = @transform_2, window_bounds = array<i64: 1, 64>}, {transform_indices = @transform_3, window_bounds = array<i64: 16, 64>}]} {
    %c0 = arith.constant 0 : index
    %c0_0 = arith.constant 0 : index
    %0 = vector.load %arg2[%c0, %c0_0] : memref<16x512xbf16, #tpu.memory_space<vmem>>, vector<16x512xbf16>
    %c0_1 = arith.constant 0 : index
    %c0_2 = arith.constant 0 : index
    %1 = vector.load %arg3[%c0_1, %c0_2] : memref<512x64xbf16, #tpu.memory_space<vmem>>, vector<512x64xbf16>
    %cst = arith.constant dense<0.000000e+00> : vector<16x64xf32>
    %2 = tpu.matmul %0, %1, %cst {dimension_numbers = #tpu.dot_dimension_numbers<[1], [0], [0], [1], [0, 0, 1, 1], [], []>} : vector<16x512xbf16>, vector<512x64xbf16>, vector<16x64xf32> -> vector<16x64xf32>
    %c0_3 = arith.constant 0 : index
    %c0_4 = arith.constant 0 : index
    %3 = vector.load %arg4[%c0_3, %c0_4] : memref<1x64xf32, #tpu.memory_space<vmem>>, vector<1x64xf32>
    %4 = vector.broadcast %3 : vector<1x64xf32> to vector<16x64xf32>
    %5 = arith.addf %2, %4 : vector<16x64xf32>
    %cst_5 = arith.constant 0.000000e+00 : f32
    %6 = vector.broadcast %cst_5 : f32 to vector<16x64xf32>
    %7 = arith.maximumf %5, %6 : vector<16x64xf32>
    %8 = arith.truncf %7 : vector<16x64xf32> to vector<16x64xbf16>
    %c0_6 = arith.constant 0 : index
    %c0_7 = arith.constant 0 : index
    %9 = vector.load %arg5[%c0_6, %c0_7] : memref<16x64xbf16, #tpu.memory_space<vmem>>, vector<16x64xbf16>
    tpu.vector_store %arg5[%c0_6, %c0_7], %8 {strides = array<i32>} : memref<16x64xbf16, #tpu.memory_space<vmem>>, vector<16x64xbf16>,
    return
  }
  func.func @transform_0(%arg0: i32, %arg1: i32) -> (i32, i32) {
    %c0_i32 = arith.constant 0 : i32
    %c0_i32_0 = arith.constant 0 : i32
    return %arg0, %c0_i32 : i32, i32
  }
  func.func @transform_1(%arg0: i32, %arg1: i32) -> (i32, i32) {
    %c0_i32 = arith.constant 0 : i32
    %c0_i32_0 = arith.constant 0 : i32
    return %c0_i32, %arg1 : i32, i32
  }
  func.func @transform_2(%arg0: i32, %arg1: i32) -> (i32, i32) {
    %c0_i32 = arith.constant 0 : i32
    %c0_i32_0 = arith.constant 0 : i32
    return %c0_i32, %arg1 : i32, i32
  }
  func.func @transform_3(%arg0: i32, %arg1: i32) -> (i32, i32) {
    %c0_i32 = arith.constant 0 : i32
    return %arg0, %arg1 : i32, i32
  }
}

module attributes {stable_mosaic.version = 11 : i64} {
  func.func @_matmul_bias_act_kernel(%arg0: i32, %arg1: i32, %arg2: memref<2x576xbf16, #tpu.memory_space<vmem>>, %arg3: memref<576x64xbf16, #tpu.memory_space<vmem>>, %arg4: memref<1x64xf32, #tpu.memory_space<vmem>>, %arg5: memref<2x64xbf16, #tpu.memory_space<vmem>>) attributes {dimension_semantics = [#tpu.dimension_semantics<parallel>, #tpu.dimension_semantics<parallel>], iteration_bounds = array<i64: 1, 1>, scalar_prefetch = 0 : i64, scratch_operands = 0 : i64, tpu.core_type = #tpu.core_type<tc>, window_params = [{transform_indices = @transform_0, window_bounds = array<i64: 2, 576>}, {transform_indices = @transform_1, window_bounds = array<i64: 576, 64>}, {transform_indices = @transform_2, window_bounds = array<i64: 1, 64>}, {transform_indices = @transform_3, window_bounds = array<i64: 2, 64>}]} {
    %c0 = arith.constant 0 : index
    %c0_0 = arith.constant 0 : index
    %0 = vector.load %arg2[%c0, %c0_0] : memref<2x576xbf16, #tpu.memory_space<vmem>>, vector<2x576xbf16>
    %c0_1 = arith.constant 0 : index
    %c0_2 = arith.constant 0 : index
    %1 = vector.load %arg3[%c0_1, %c0_2] : memref<576x64xbf16, #tpu.memory_space<vmem>>, vector<576x64xbf16>
    %cst = arith.constant dense<0.000000e+00> : vector<2x64xf32>
    %2 = tpu.matmul %0, %1, %cst {dimension_numbers = #tpu.dot_dimension_numbers<[1], [0], [0], [1], [0, 0, 1, 1], [], []>} : vector<2x576xbf16>, vector<576x64xbf16>, vector<2x64xf32> -> vector<2x64xf32>
    %c0_3 = arith.constant 0 : index
    %c0_4 = arith.constant 0 : index
    %3 = vector.load %arg4[%c0_3, %c0_4] : memref<1x64xf32, #tpu.memory_space<vmem>>, vector<1x64xf32>
    %4 = vector.broadcast %3 : vector<1x64xf32> to vector<2x64xf32>
    %5 = arith.addf %2, %4 : vector<2x64xf32>
    %cst_5 = arith.constant 0.000000e+00 : f32
    %6 = vector.broadcast %cst_5 : f32 to vector<2x64xf32>
    %7 = arith.maximumf %5, %6 : vector<2x64xf32>
    %8 = arith.truncf %7 : vector<2x64xf32> to vector<2x64xbf16>
    %c0_6 = arith.constant 0 : index
    %c0_7 = arith.constant 0 : index
    %9 = vector.load %arg5[%c0_6, %c0_7] : memref<2x64xbf16, #tpu.memory_space<vmem>>, vector<2x64xbf16>
    tpu.vector_store %arg5[%c0_6, %c0_7], %8 {strides = array<i32>} : memref<2x64xbf16, #tpu.memory_space<vmem>>, vector<2x64xbf16>,
    return
  }
  func.func @transform_0(%arg0: i32, %arg1: i32) -> (i32, i32) {
    %c0_i32 = arith.constant 0 : i32
    %c0_i32_0 = arith.constant 0 : i32
    return %arg0, %c0_i32 : i32, i32
  }
  func.func @transform_1(%arg0: i32, %arg1: i32) -> (i32, i32) {
    %c0_i32 = arith.constant 0 : i32
    %c0_i32_0 = arith.constant 0 : i32
    return %c0_i32, %arg1 : i32, i32
  }
  func.func @transform_2(%arg0: i32, %arg1: i32) -> (i32, i32) {
    %c0_i32 = arith.constant 0 : i32
    %c0_i32_0 = arith.constant 0 : i32
    return %c0_i32, %arg1 : i32, i32
  }
  func.func @transform_3(%arg0: i32, %arg1: i32) -> (i32, i32) {
    %c0_i32 = arith.constant 0 : i32
    return %arg0, %arg1 : i32, i32
  }
}

module attributes {stable_mosaic.version = 11 : i64} {
  func.func @_fused_fc_kernel(%arg0: i32, %arg1: memref<2x64xbf16, #tpu.memory_space<vmem>>, %arg2: memref<64x512xbf16, #tpu.memory_space<vmem>>, %arg3: memref<1x512xf32, #tpu.memory_space<vmem>>, %arg4: memref<512x6xbf16, #tpu.memory_space<vmem>>, %arg5: memref<1x6xf32, #tpu.memory_space<vmem>>, %arg6: memref<2x6xf32, #tpu.memory_space<vmem>>) attributes {dimension_semantics = [#tpu.dimension_semantics<parallel>], iteration_bounds = array<i64: 1>, scalar_prefetch = 0 : i64, scratch_operands = 0 : i64, tpu.core_type = #tpu.core_type<tc>, window_params = [{transform_indices = @transform_0, window_bounds = array<i64: 2, 64>}, {pipeline_mode = #tpu.pipeline_mode<synchronous>, transform_indices = @transform_1, window_bounds = array<i64: 64, 512>}, {pipeline_mode = #tpu.pipeline_mode<synchronous>, transform_indices = @transform_2, window_bounds = array<i64: 1, 512>}, {pipeline_mode = #tpu.pipeline_mode<synchronous>, transform_indices = @transform_3, window_bounds = array<i64: 512, 6>}, {pipeline_mode = #tpu.pipeline_mode<synchronous>, transform_indices = @transform_4, window_bounds = array<i64: 1, 6>}, {transform_indices = @transform_5, window_bounds = array<i64: 2, 6>}]} {
    %c0 = arith.constant 0 : index
    %c0_0 = arith.constant 0 : index
    %0 = vector.load %arg1[%c0, %c0_0] : memref<2x64xbf16, #tpu.memory_space<vmem>>, vector<2x64xbf16>
    %c0_1 = arith.constant 0 : index
    %c0_2 = arith.constant 0 : index
    %1 = vector.load %arg2[%c0_1, %c0_2] : memref<64x512xbf16, #tpu.memory_space<vmem>>, vector<64x512xbf16>
    %cst = arith.constant dense<0.000000e+00> : vector<2x512xf32>
    %2 = tpu.matmul %0, %1, %cst {dimension_numbers = #tpu.dot_dimension_numbers<[1], [0], [0], [1], [0, 0, 1, 1], [], []>} : vector<2x64xbf16>, vector<64x512xbf16>, vector<2x512xf32> -> vector<2x512xf32>
    %c0_3 = arith.constant 0 : index
    %c0_4 = arith.constant 0 : index
    %3 = vector.load %arg3[%c0_3, %c0_4] : memref<1x512xf32, #tpu.memory_space<vmem>>, vector<1x512xf32>
    %4 = vector.broadcast %3 : vector<1x512xf32> to vector<2x512xf32>
    %5 = arith.addf %2, %4 : vector<2x512xf32>
    %cst_5 = arith.constant 0.000000e+00 : f32
    %6 = vector.broadcast %cst_5 : f32 to vector<2x512xf32>
    %7 = arith.maximumf %5, %6 : vector<2x512xf32>
    %8 = arith.truncf %7 : vector<2x512xf32> to vector<2x512xbf16>
    %c0_6 = arith.constant 0 : index
    %c0_7 = arith.constant 0 : index
    %9 = vector.load %arg4[%c0_6, %c0_7] : memref<512x6xbf16, #tpu.memory_space<vmem>>, vector<512x6xbf16>
    %cst_8 = arith.constant dense<0.000000e+00> : vector<2x6xf32>
    %10 = tpu.matmul %8, %9, %cst_8 {dimension_numbers = #tpu.dot_dimension_numbers<[1], [0], [0], [1], [0, 0, 1, 1], [], []>} : vector<2x512xbf16>, vector<512x6xbf16>, vector<2x6xf32> -> vector<2x6xf32>
    %c0_9 = arith.constant 0 : index
    %c0_10 = arith.constant 0 : index
    %11 = vector.load %arg5[%c0_9, %c0_10] : memref<1x6xf32, #tpu.memory_space<vmem>>, vector<1x6xf32>
    %12 = vector.broadcast %11 : vector<1x6xf32> to vector<2x6xf32>
    %13 = arith.addf %10, %12 : vector<2x6xf32>
    %c0_11 = arith.constant 0 : index
    %c0_12 = arith.constant 0 : index
    %14 = vector.load %arg6[%c0_11, %c0_12] : memref<2x6xf32, #tpu.memory_space<vmem>>, vector<2x6xf32>
    tpu.vector_store %arg6[%c0_11, %c0_12], %13 {strides = array<i32>} : memref<2x6xf32, #tpu.memory_space<vmem>>, vector<2x6xf32>,
    return
  }
  func.func @transform_0(%arg0: i32) -> (i32, i32) {
    %c0_i32 = arith.constant 0 : i32
    %c0_i32_0 = arith.constant 0 : i32
    return %arg0, %c0_i32 : i32, i32
  }
  func.func @transform_1(%arg0: i32) -> (i32, i32) {
    %c0_i32 = arith.constant 0 : i32
    %c0_i32_0 = arith.constant 0 : i32
    %c0_i32_1 = arith.constant 0 : i32
    return %c0_i32, %c0_i32_0 : i32, i32
  }
  func.func @transform_2(%arg0: i32) -> (i32, i32) {
    %c0_i32 = arith.constant 0 : i32
    %c0_i32_0 = arith.constant 0 : i32
    %c0_i32_1 = arith.constant 0 : i32
    return %c0_i32, %c0_i32_0 : i32, i32
  }
  func.func @transform_3(%arg0: i32) -> (i32, i32) {
    %c0_i32 = arith.constant 0 : i32
    %c0_i32_0 = arith.constant 0 : i32
    %c0_i32_1 = arith.constant 0 : i32
    return %c0_i32, %c0_i32_0 : i32, i32
  }
  func.func @transform_4(%arg0: i32) -> (i32, i32) {
    %c0_i32 = arith.constant 0 : i32
    %c0_i32_0 = arith.constant 0 : i32
    %c0_i32_1 = arith.constant 0 : i32
    return %c0_i32, %c0_i32_0 : i32, i32
  }
  func.func @transform_5(%arg0: i32) -> (i32, i32) {
    %c0_i32 = arith.constant 0 : i32
    %c0_i32_0 = arith.constant 0 : i32
    return %arg0, %c0_i32 : i32, i32
  }
}

</mosaic_0001>

<bundles_post_ra>
// kernel: qnetwork_forward.4
= control target key start
LH: loop header
LB: loop body
LE: loop exit
PB: predicated region body
PF: predicated region fallthrough
CT: control target
= control target key end

     0   :  { %s836_s12 = smov 0   ;;  %s838_s13 = smov 0   ;;  %s952_s0 = inlined_call_operand.vmem [shape: bf16[128,256], index: 0, kind: input, shape index: {}]   ;;  %s953_s1 = inlined_call_operand.vmem [shape: bf16[256,32], index: 1, kind: input, shape index: {}]   ;;  %s954_s2 = inlined_call_operand.vmem [shape: f32[1,32], index: 2, kind: input, shape index: {}]   ;;  %s955_s3 = inlined_call_operand.vmem [shape: bf16[128,32], index: 3, kind: output, shape index: {}]  }
   0x1   :  { %s840_s14 = smov 0  }
   0x2 LB: > { %s25_s15 = sadd.s32 1, %s810_s13  ;;  %p634_p0 = scmp.ge.s32.totalorder %s814_s14, 1  ;;  %s814_s14 = sphi %s840_s14, %s13_s14   ;;  %s810_s13 = sphi %s838_s13, %s957_s13   ;;  %s806_s12 = sphi %s836_s12, %s956_s12  }
   0x3   : > { %p27_p1 = scmp.ge.s32.totalorder %s25_s15, 2  ;;  %p170_p2 = scmp.lt.s32.totalorder %s814_s14, 3 }
   0x5   : > { %s959_s15 = smov (%p27_p1, %s25_s15), 0  ;;  %p171_p3 = pnand %p634_p0, %p170_p2 }
   0x6   : > { %s635_s18 = sshll.u32 (!%p171_p3), %s806_s12, 3 }
   0x7   : > { %174 = sbr.rel (%p171_p3) target bundleno = 261 (0x105), region = 32  ;;  %p206_p4 = scmp.lt.s32.totalorder (!%p171_p3), %s635_s18, 15 }
   0xc   : > { %v764_v0 = vld [vmem:[%s953_s1 + $0x78] sm:$0xff]   ;;  %v766_v2 = vld [vmem:[%s953_s1 + $0x70] sm:$0xff]   ;;  %v768_v4 = vld [vmem:[%s953_s1 + $0x68] sm:$0xff]   ;;  %s961_s18 = smov (!%p206_p4, %s635_s18), 15  ;;  %vm517_vm0 = vcmask 257024  }
   0xd   : > { %v765_v1 = vld [vmem:[%s953_s1 + $0x38] sm:$0xff]   ;;  %684 = vmatprep.subr.bf16.mxu0 %v764_v0  ;;  %724 = vmatprep.subr.bf16.mxu1 %v764_v0  ;;  %v767_v3 = vld [vmem:[%s953_s1 + $0x30] sm:$0xff]   ;;  %v769_v5 = vld [vmem:[%s953_s1 + $0x28] sm:$0xff]   ;;  %s675_s6 = sshll.u32 %s961_s18, 3  ;;  %s639_s5 = sshll.u32 %s961_s18, 2 }
   0xe   : > { %685 = vmatpush3.bf16.msra.mxu0 %v765_v1  ;;  %732 = vmatpush3.bf16.msra.mxu1 %v765_v1  ;;  %v770_v6 = vld [vmem:[%s953_s1 + $0x60] sm:$0xff]   ;;  %v772_v8 = vld [vmem:[%s953_s1 + $0x58] sm:$0xff]   ;;  %s887_s11 = scalar_lea.vmem %s952_s0, %s675_s6  ;;  %v774_v10 = vld [vmem:[%s953_s1 + $0x50] sm:$0xff]   ;;  %s925_s8 = scalar_lea.vmem %s955_s3, %s639_s5 }
   0xf   : > { %686 = vmatprep.subr.bf16.mxu0 %v766_v2  ;;  %725 = vmatprep.subr.bf16.mxu1 %v766_v2  ;;  %v771_v7 = vld [vmem:[%s953_s1 + $0x20] sm:$0xff]   ;;  %v773_v9 = vld [vmem:[%s953_s1 + $0x18] sm:$0xff]   ;;  %v775_v13 = vld [vmem:[%s953_s1 + $0x10] sm:$0xff]  }
  0x10   : > { %v782_v11 = vld [vmem:[%s887_s11 + $0x4] ss:$8 sps:$4 sm:$0xff]   ;;  %v780_v18 = vld [vmem:[%s887_s11] ss:$8 sps:$4 sm:$0xff]   ;;  %v786_v20 = vld [vmem:[%s887_s11 + $0x14] ss:$8 sps:$4 sm:$0xff]  }
  0x11   : > { %v785_v12 = vld [vmem:[%s887_s11 + $0x24] ss:$8 sps:$4 sm:$0xff]   ;;  %444 = vmatprep.mubr.bf16.mxu0 %v782_v11  ;;  %v783_v19 = vld [vmem:[%s887_s11 + $0x20] ss:$8 sps:$4 sm:$0xff]   ;;  %v788_v21 = vld [vmem:[%s887_s11 + $0x34] ss:$8 sps:$4 sm:$0xff]  }
  0x12   : > { %687 = vmatpush3.bf16.msra.mxu0 %v767_v3  ;;  %733 = vmatpush3.bf16.msra.mxu1 %v767_v3  ;;  %v776_v14 = vld [vmem:[%s953_s1 + $0x48] sm:$0xff]   ;;  %v778_v16 = vld [vmem:[%s953_s1 + $0x40] sm:$0xff]   ;;  %v790_v22 = vld [vmem:[%s887_s11 + $0x10] ss:$8 sps:$4 sm:$0xff]  }
  0x13   : > { %688 = vmatprep.subr.bf16.mxu0 %v768_v4  ;;  %726 = vmatprep.subr.bf16.mxu1 %v768_v4  ;;  %v777_v15 = vld [vmem:[%s953_s1 + $0x8] sm:$0xff]   ;;  %v779_v17 = vld [vmem:[%s953_s1] sm:$0xff]   ;;  %v791_v23 = vld [vmem:[%s887_s11 + $0x30] ss:$8 sps:$4 sm:$0xff]  }
  0x14   : > { %460 = vmatprep.mubr.bf16.mxu1 %v785_v12  ;;  %v640_v26 = vld [vmem:[%s954_s2] ss:$0 sm:$0xff] }
  0x16   : > { %689 = vmatpush3.bf16.msra.mxu0 %v769_v5  ;;  %734 = vmatpush3.bf16.msra.mxu1 %v769_v5 }
  0x17   : > { %690 = vmatprep.subr.bf16.mxu0 %v770_v6  ;;  %727 = vmatprep.subr.bf16.mxu1 %v770_v6 }
  0x1a   : > { %691 = vmatpush3.bf16.msra.mxu0 %v771_v7  ;;  %735 = vmatpush3.bf16.msra.mxu1 %v771_v7 }
  0x1b   : > { %692 = vmatprep.subr.bf16.mxu0 %v772_v8  ;;  %728 = vmatprep.subr.bf16.mxu1 %v772_v8 }
  0x1e   : > { %693 = vmatpush3.bf16.msra.mxu0 %v773_v9  ;;  %736 = vmatpush3.bf16.msra.mxu1 %v773_v9 }
  0x1f   : > { %694 = vmatprep.subr.bf16.mxu0 %v774_v10  ;;  %729 = vmatprep.subr.bf16.mxu1 %v774_v10 }
  0x22   : > { %695 = vmatpush3.bf16.msra.mxu0 %v775_v13  ;;  %737 = vmatpush3.bf16.msra.mxu1 %v775_v13 }
  0x23   : > { %696 = vmatprep.subr.bf16.mxu0 %v776_v14  ;;  %730 = vmatprep.subr.bf16.mxu1 %v776_v14 }
  0x26   : > { %697 = vmatpush3.bf16.msra.mxu0 %v777_v15  ;;  %738 = vmatpush3.bf16.msra.mxu1 %v777_v15 }
  0x27   : > { %698 = vmatprep.subr.bf16.mxu0 %v778_v16  ;;  %731 = vmatprep.subr.bf16.mxu1 %v778_v16 }
  0x2a   : > { %699 = vmatpush3.bf16.msra.mxu0 %v779_v17  ;;  %739 = vmatpush3.bf16.msra.mxu1 %v779_v17 }
  0x2d   : > { %445 = vmatmul.mubr.bf16.vlgmr.msra.gmra.mxu0 %v780_v18  ;;  %461 = vmatmul.mubr.bf16.vlgmr.msra.gmra.mxu1 %v783_v19 }
  0x2e   : > { %452 = vmatprep.mubr.bf16.mxu0 %v786_v20  ;;  %468 = vmatprep.mubr.bf16.mxu1 %v788_v21 }
  0x35   : > { %453 = vmatmul.mubr.bf16.gmra.mxu0 %v790_v22  ;;  %469 = vmatmul.mubr.bf16.gmra.mxu1 %v791_v23 }
  0xed   : > { %v700_v24 = vpop.f32.mrf.mxu0  ;;  %v712_v25 = vpop.f32.mrf.mxu1 }
  0xef   : > { %v701_v27 = vpop.f32.mrf.mxu0  ;;  %v713_v28 = vpop.f32.mrf.mxu1 }
  0xf0   : > { %v702_v29 = vadd.f32 %v701_v27, %v700_v24  ;;  %v714_v30 = vadd.f32 %v713_v28, %v712_v25 }
  0xf1   : > { %v703_v31 = vpop.f32.mrf.mxu0  ;;  %v715_v32 = vpop.f32.mrf.mxu1 }
  0xf2   : > { %v447_v33 = vadd.f32 %v702_v29, %v640_v26  ;;  %v463_v34 = vadd.f32 %v714_v30, %v640_v26 }
  0xf3   : > { %v704_v35 = vpop.f32.mrf.mxu0  ;;  %v716_v36 = vpop.f32.mrf.mxu1 }
  0xf4   : > { %v477_v37 = vmax.f32 %v447_v33, 0.0  ;;  %v481_v38 = vmax.f32 %v463_v34, 0.0  ;;  %v705_v39 = vadd.f32 %v704_v35, %v703_v31  ;;  %v717_v40 = vadd.f32 %v716_v36, %v715_v32 }
  0xf5   : > { %v706_v41 = vpop.f32.mrf.mxu0  ;;  %v718_v42 = vpop.f32.mrf.mxu1 }
  0xf6   : > { %v676_v43 = vpack.c.bf16 %v477_v37, %v477_v37  ;;  %v680_v44 = vpack.c.bf16 %v481_v38, %v481_v38  ;;  %v450_v45 = vadd.f32 %v705_v39, %v640_v26  ;;  %v466_v46 = vadd.f32 %v717_v40, %v640_v26 }
  0xf7   : > { %v707_v47 = vpop.f32.mrf.mxu0  ;;  %v719_v48 = vpop.f32.mrf.mxu1 }
  0xf8   : > { %518 = vst.msk [vmem:[%s925_s8] sm:$0xf] %vm517_vm0, %v676_v43  ;;  %522 = vst.msk [vmem:[%s925_s8 + $0x10] sm:$0xf] %vm517_vm0, %v680_v44  ;;  %v478_v49 = vmax.f32 %v450_v45, 0.0  ;;  %v482_v50 = vmax.f32 %v466_v46, 0.0  ;;  %v708_v51 = vadd.f32 %v707_v47, %v706_v41  ;;  %v720_v52 = vadd.f32 %v719_v48, %v718_v42 }
  0xf9   : > { %v709_v53 = vpop.f32.mrf.mxu0  ;;  %v721_v54 = vpop.f32.mrf.mxu1 }
  0xfa   : > { %v677_v55 = vpack.c.bf16 %v478_v49, %v478_v49  ;;  %v681_v56 = vpack.c.bf16 %v482_v50, %v482_v50  ;;  %v455_v57 = vadd.f32 %v708_v51, %v640_v26  ;;  %v471_v58 = vadd.f32 %v720_v52, %v640_v26 }
  0xfb   : > { %v710_v59 = vpop.f32.mrf.mxu0  ;;  %v722_v60 = vpop.f32.mrf.mxu1 }
  0xfc   : > { %519 = vst.msk [vmem:[%s925_s8 + $0x4] sm:$0xf] %vm517_vm0, %v677_v55  ;;  %523 = vst.msk [vmem:[%s925_s8 + $0x14] sm:$0xf] %vm517_vm0, %v681_v56  ;;  %v479_v61 = vmax.f32 %v455_v57, 0.0  ;;  %v483_v62 = vmax.f32 %v471_v58, 0.0  ;;  %v711_v63 = vadd.f32 %v710_v59, %v709_v53  ;;  %v723_v0 = vadd.f32 %v722_v60, %v721_v54 }
  0xfe   : > { %v678_v1 = vpack.c.bf16 %v479_v61, %v479_v61  ;;  %v682_v2 = vpack.c.bf16 %v483_v62, %v483_v62  ;;  %v458_v3 = vadd.f32 %v711_v63, %v640_v26  ;;  %v474_v4 = vadd.f32 %v723_v0, %v640_v26 }
 0x100   : > { %520 = vst.msk [vmem:[%s925_s8 + $0x8] sm:$0xf] %vm517_vm0, %v678_v1  ;;  %524 = vst.msk [vmem:[%s925_s8 + $0x18] sm:$0xf] %vm517_vm0, %v682_v2  ;;  %v480_v5 = vmax.f32 %v458_v3, 0.0  ;;  %v484_v6 = vmax.f32 %v474_v4, 0.0 }
 0x102   : > { %v679_v7 = vpack.c.bf16 %v480_v5, %v480_v5  ;;  %v683_v8 = vpack.c.bf16 %v484_v6, %v484_v6 }
 0x104   : > { %521 = vst.msk [vmem:[%s925_s8 + $0xc] sm:$0xf] %vm517_vm0, %v679_v7  ;;  %525 = vst.msk [vmem:[%s925_s8 + $0x1c] sm:$0xf] %vm517_vm0, %v683_v8 }
 0x105 PF: > { %s13_s14 = sadd.s32 1, %s814_s14   ;;  %s956_s12 = smov %s810_s13 }
 0x106   : > { %p10_p5 = scmp.ge.s32.totalorder %s13_s14, 4   ;;  %s957_s13 = smov %s959_s15 }
 0x108   :  { %12 = sbr.rel (!%p10_p5) target bundleno = 2 (0x2), region = 68 }

// kernel: qnetwork_forward.5
= control target key start
LH: loop header
LB: loop body
LE: loop exit
PB: predicated region body
PF: predicated region fallthrough
CT: control target
= control target key end

     0   :  { %s1269_s12 = smov 0   ;;  %s1271_s13 = smov 0   ;;  %s1470_s0 = inlined_call_operand.vmem [shape: bf16[18,512], index: 0, kind: input, shape index: {}]   ;;  %s1471_s1 = inlined_call_operand.vmem [shape: bf16[512,64], index: 1, kind: input, shape index: {}]   ;;  %s1472_s2 = inlined_call_operand.vmem [shape: f32[1,64], index: 2, kind: input, shape index: {}]   ;;  %s1473_s3 = inlined_call_operand.vmem [shape: bf16[18,64], index: 3, kind: output, shape index: {}]  }
   0x1   :  { %s1273_s14 = smov 0   ;;  %s1275_s15 = smov 0  }
   0x2   :  { %s1277_s16 = smov 0  }
   0x3 LB: > { %s886_s17 = sadd.s32 4294967295, %s1215_s16   ;;  %s25_s18 = sadd.s32 1, %s1211_s15  ;;  %s1215_s16 = sphi %s1277_s16, %s13_s16   ;;  %s1211_s15 = sphi %s1275_s15, %s1478_s15   ;;  %s1207_s14 = sphi %s1273_s14, %s1477_s14   ;;  %s1203_s13 = sphi %s1271_s13, %s1476_s13   ;;  %s1199_s12 = sphi %s1269_s12, %s1475_s12  }
   0x4   : > { %p27_p0 = scmp.ge.s32.totalorder %s25_s18, 2  ;;  %s112_s19 = sadd.s32 1, %s1203_s13 }
   0x5   : > { %p122_p1 = scmp.ne.s32.totalorder %s1203_s13, %s1199_s12  ;;  %p123_p2 = scmp.eq.s32.totalorder %s886_s17, 1 }
   0x6   : > { %s1480_s18 = smov (%p27_p0, %s25_s18), 0  ;;  %p892_p4 = scmp.ge.s32.totalorder %s1215_s16, 1 }
   0x7   : > { %p1301_p3 = por %p123_p2, %p122_p1  ;;  %s107_s21 = ssub.s32 %s1211_s15, %s1480_s18 }
   0x8   : > { %p180_p5 = scmp.lt.s32.totalorder %s1215_s16, 3  ;;  %p110_p6 = scmp.eq.s32.totalorder %s107_s21, 0 }
   0xa   : > { %p181_p7 = pnand %p892_p4, %p180_p5 }
   0xb   : > { %s1310_s22 = scalar_select %p110_p6, %s1203_s13, %s112_s19  }
   0xc   : > { %184 = sbr.rel (%p181_p7) target bundleno = 300 (0x12c), region = 32  ;;  %s1361_s9 = sshll.u32 (!%p181_p7), %s1207_s14, 1 }
   0xd   : > { %p222_p8 = scmp.lt.s32.totalorder (!%p181_p7), %s1361_s9, 2  ;;  %s213_s19 = sand.u32 (!%p181_p7), 1, %s1199_s12  }
   0xe   : > { %s893_s21 = sshll.u32 (!%p181_p7), %s213_s19, 3 }
  0x11   : > { %v1107_v0 = vld [vmem:[%s1471_s1 + $0x78] sm:$0xff]   ;;  %v1111_v4 = vld [vmem:[%s1471_s1 + $0x70] sm:$0xff]   ;;  %v1115_v8 = vld [vmem:[%s1471_s1 + $0x68] sm:$0xff]   ;;  %s223_s5 = scalar_select %p222_p8, %s1361_s9, 2  ;;  %vm625_vm0 = vcmask 519168  }
  0x12   : > { %v1108_v1 = vld [vmem:[%s1471_s1 + $0xf8] sm:$0xff]   ;;  %959 = vmatprep.subr.bf16.mxu0 %v1107_v0  ;;  %v1112_v5 = vld [vmem:[%s1471_s1 + $0xf0] sm:$0xff]   ;;  %v1116_v9 = vld [vmem:[%s1471_s1 + $0xe8] sm:$0xff]   ;;  %s636_s12 = ssub.s32 (%p1301_p3), 3, %s1361_s9  ;;  %s956_s24 = sshll.u32 (%p1301_p3), %s1207_s14, 3 }
  0x13   : > { %v1109_v2 = vld [vmem:[%s1471_s1 + $0x38] sm:$0xff]   ;;  %981 = vmatprep.subr.bf16.mxu1 %v1108_v1  ;;  %v1113_v6 = vld [vmem:[%s1471_s1 + $0x30] sm:$0xff]   ;;  %v1117_v10 = vld [vmem:[%s1471_s1 + $0x28] sm:$0xff]   ;;  %s953_s23 = sshll.u32 %s223_s5, 4  ;;  %p637_p9 = scmp.lt.s32.totalorder (%p1301_p3), %s636_s12, 2 }
  0x14   : > { %v1110_v3 = vld [vmem:[%s1471_s1 + $0xb8] sm:$0xff]   ;;  %960 = vmatpush3.bf16.msra.mxu0 %v1109_v2  ;;  %v1114_v7 = vld [vmem:[%s1471_s1 + $0xb0] sm:$0xff]   ;;  %v1118_v11 = vld [vmem:[%s1471_s1 + $0xa8] sm:$0xff]   ;;  %s226_s6 = scalar_lea.vmem %s1470_s0, %s953_s23  ;;  %s1420_s23 = scalar_lea.vmem [#allocation2], %s893_s21  }
  0x15   : > { %982 = vmatpush3.bf16.msra.mxu1 %v1110_v3  ;;  %961 = vmatprep.subr.bf16.mxu0 %v1111_v4  ;;  %v1119_v12 = vld [vmem:[%s1471_s1 + $0x60] sm:$0xff]   ;;  %v1123_v16 = vld [vmem:[%s1471_s1 + $0x58] sm:$0xff]   ;;  %v1127_v20 = vld [vmem:[%s1471_s1 + $0x50] sm:$0xff]   ;;  %s1431_s27 = scalar_lea.vmem (%p1301_p3), %s1473_s3, %s956_s24  }
  0x16   : > { %983 = vmatprep.subr.bf16.mxu1 %v1112_v5  ;;  %v1120_v13 = vld [vmem:[%s1471_s1 + $0xe0] sm:$0xff]   ;;  %v1124_v17 = vld [vmem:[%s1471_s1 + $0xd8] sm:$0xff]   ;;  %v1128_v21 = vld [vmem:[%s1471_s1 + $0xd0] sm:$0xff]  }
  0x17   : > { %v1121_v14 = vld [vmem:[%s1471_s1 + $0x20] sm:$0xff]   ;;  %v1125_v18 = vld [vmem:[%s1471_s1 + $0x18] sm:$0xff]   ;;  %v1129_v22 = vld [vmem:[%s1471_s1 + $0x10] sm:$0xff]  }
  0x18   : > { %962 = vmatpush3.bf16.msra.mxu0 %v1113_v6  ;;  %v1122_v15 = vld [vmem:[%s1471_s1 + $0xa0] sm:$0xff]   ;;  %v1126_v19 = vld [vmem:[%s1471_s1 + $0x98] sm:$0xff]   ;;  %v1130_v23 = vld [vmem:[%s1471_s1 + $0x90] sm:$0xff]  }
  0x19   : > { %984 = vmatpush3.bf16.msra.mxu1 %v1114_v7  ;;  %963 = vmatprep.subr.bf16.mxu0 %v1115_v8  ;;  %v1131_v24 = vld [vmem:[%s1471_s1 + $0x48] sm:$0xff]   ;;  %v1135_v28 = vld [vmem:[%s1471_s1 + $0x40] sm:$0xff]  }
  0x1a   : > { %985 = vmatprep.subr.bf16.mxu1 %v1116_v9  ;;  %v1132_v25 = vld [vmem:[%s1471_s1 + $0xc8] sm:$0xff]   ;;  %v1136_v29 = vld [vmem:[%s1471_s1 + $0xc0] sm:$0xff]  }
  0x1b   : > { %v1133_v26 = vld [vmem:[%s1471_s1 + $0x8] sm:$0xff]   ;;  %v1137_v30 = vld [vmem:[%s1471_s1] sm:$0xff]  }
  0x1c   : > { %964 = vmatpush3.bf16.msra.mxu0 %v1117_v10  ;;  %v1134_v27 = vld [vmem:[%s1471_s1 + $0x88] sm:$0xff]   ;;  %v1138_v31 = vld [vmem:[%s1471_s1 + $0x80] sm:$0xff]  }
  0x1d   : > { %986 = vmatpush3.bf16.msra.mxu1 %v1118_v11  ;;  %965 = vmatprep.subr.bf16.mxu0 %v1119_v12  ;;  %v1139_v32 = vld [vmem:[%s226_s6] ss:$16 sps:$4 sm:$0xff]   ;;  %v1141_v33 = vld [vmem:[%s226_s6 + $0x4] ss:$16 sps:$4 sm:$0xff]   ;;  %v1142_v34 = vld [vmem:[%s226_s6 + $0x8] ss:$16 sps:$4 sm:$0xff]  }
  0x1e   : > { %987 = vmatprep.subr.bf16.mxu1 %v1120_v13  ;;  %v1144_v35 = vld [vmem:[%s226_s6 + $0xc] ss:$16 sps:$4 sm:$0xff]   ;;  %565 = vmatprep.mubr.bf16.mxu0 %v1141_v33  ;;  %v897_v38 = vld [vmem:[%s1472_s2] ss:$0 sm:$0xff] }
  0x1f   : > { %606 = vmatprep.mubr.bf16.mxu1 %v1144_v35 }
  0x20   : > { %966 = vmatpush3.bf16.msra.mxu0 %v1121_v14 }
  0x21   : > { %988 = vmatpush3.bf16.msra.mxu1 %v1122_v15  ;;  %967 = vmatprep.subr.bf16.mxu0 %v1123_v16 }
  0x22   : > { %989 = vmatprep.subr.bf16.mxu1 %v1124_v17 }
  0x24   : > { %968 = vmatpush3.bf16.msra.mxu0 %v1125_v18 }
  0x25   : > { %990 = vmatpush3.bf16.msra.mxu1 %v1126_v19  ;;  %969 = vmatprep.subr.bf16.mxu0 %v1127_v20 }
  0x26   : > { %991 = vmatprep.subr.bf16.mxu1 %v1128_v21 }
  0x28   : > { %970 = vmatpush3.bf16.msra.mxu0 %v1129_v22 }
  0x29   : > { %992 = vmatpush3.bf16.msra.mxu1 %v1130_v23  ;;  %971 = vmatprep.subr.bf16.mxu0 %v1131_v24 }
  0x2a   : > { %993 = vmatprep.subr.bf16.mxu1 %v1132_v25 }
  0x2c   : > { %972 = vmatpush3.bf16.msra.mxu0 %v1133_v26 }
  0x2d   : > { %994 = vmatpush3.bf16.msra.mxu1 %v1134_v27  ;;  %973 = vmatprep.subr.bf16.mxu0 %v1135_v28 }
  0x2e   : > { %995 = vmatprep.subr.bf16.mxu1 %v1136_v29 }
  0x30   : > { %974 = vmatpush3.bf16.msra.mxu0 %v1137_v30 }
  0x31   : > { %996 = vmatpush3.bf16.msra.mxu1 %v1138_v31 }
  0x33   : > { %566 = vmatmul.mubr.bf16.vlgmr.msra.gmra.mxu0 %v1139_v32 }
  0x34   : > { %607 = vmatmul.mubr.bf16.vlgmr.msra.gmra.mxu1 %v1142_v34 }
  0xf3   : > { %v975_v36 = vpop.f32.mrf.mxu0 }
  0xf4   : > { %v997_v37 = vpop.f32.mrf.mxu1 }
  0xf5   : > { %v976_v39 = vpop.f32.mrf.mxu0 }
  0xf6   : > { %v977_v40 = vadd.f32 %v976_v39, %v975_v36  ;;  %v998_v41 = vpop.f32.mrf.mxu1 }
  0xf7   : > { %v978_v42 = vpop.f32.mrf.mxu0  ;;  %v999_v44 = vadd.f32 %v998_v41, %v997_v37 }
  0xf8   : > { %v568_v43 = vadd.f32 %v977_v40, %v897_v38  ;;  %v1000_v45 = vpop.f32.mrf.mxu1 }
  0xf9   : > { %v979_v46 = vpop.f32.mrf.mxu0 }
  0xfa   : > { %v609_v47 = vadd.f32 %v999_v44, %v568_v43  ;;  %v980_v48 = vadd.f32 %v979_v46, %v978_v42  ;;  %v1001_v49 = vpop.f32.mrf.mxu1 }
  0xfb   : > { %v1002_v52 = vadd.f32 %v1001_v49, %v1000_v45 }
  0xfc   : > { %v615_v50 = vmax.f32 %v609_v47, 0.0  ;;  %v571_v51 = vadd.f32 %v980_v48, %v897_v38 }
  0xfe   : > { %v954_v53 = vpack.c.bf16 %v615_v50, %v615_v50  ;;  %v612_v54 = vadd.f32 %v1002_v52, %v571_v51 }
 0x100   : > { %626 = vst.msk [vmem:[%s1420_s23] sm:$0xf] %vm625_vm0, %v954_v53  ;;  %v616_v55 = vmax.f32 %v612_v54, 0.0  ;;  %634 = sbr.rel (!%p1301_p3) target bundleno = 300 (0x12c), region = 36 }
 0x102   : > { %v955_v56 = vpack.c.bf16 %v616_v55, %v616_v55 }
 0x104   : > { %627 = vst.msk [vmem:[%s1420_s23 + $0x4] sm:$0xf] %vm625_vm0, %v955_v56 }
 0x105   : > { %s1482_s12 = smov (!%p637_p9, %s636_s12), 2 }
 0x106   : > { %s938_s28 = sshll.u32 %s1482_s12, 6 }
 0x107   : > { %p941_p10 = scmp.eq.s32.totalorder %s938_s28, 0 }
 0x108   : > { %s1437_s29 = sshrl.u32 (!%p941_p10), %s1482_s12, 1 }
 0x109   : > { %646 = sbr.rel (%p941_p10) target bundleno = 300 (0x12c), region = 40  ;;  %p942_p11 = scmp.le.s32.totalorder (!%p941_p10), %s1437_s29, 0 }
 0x10e   : > { %816 = sbr.rel (%p942_p11) target bundleno = 283 (0x11b), region = 118  ;;  %s1217_s14 = smov (!%p942_p11), %s1431_s27  }
 0x10f   : > { %s1221_s20 = smov (!%p942_p11), %s1420_s23   ;;  %s1225_s9 = smov (!%p942_p11), 0  }
 0x110   : > { %s1229_s30 = smov (!%p942_p11), 0  }
 0x113 LB: >> { %v663_v57 = vld [vmem:[%s1223_s20] sm:$0xf]  ;;  %v665_v58 = vld [vmem:[%s1223_s20 + $0x4] sm:$0xf]  ;;  %s667_s4 = sadd.s32 1, %s1227_s9  ;;  %s657_s30 = sadd.s32 1, %s1231_s30   ;;  %s1231_s30 = sphi %s1229_s30, %s657_s30   ;;  %s1227_s9 = sphi %s1225_s9, %s1226_s9   ;;  %s1223_s20 = sphi %s1221_s20, %s672_s20   ;;  %s1219_s14 = sphi %s1217_s14, %s673_s14  }
 0x114   : >> { %664 = vst [vmem:[%s1219_s14] sm:$0xf] %v663_v57  ;;  %666 = vst [vmem:[%s1219_s14 + $0x4] sm:$0xf] %v665_v58  ;;  %p668_p12 = scmp.ge.s32.totalorder %s667_s4, %s1437_s29  ;;  %p656_p13 = scmp.ge.s32.totalorder %s657_s30, %s1437_s29 }
 0x116   : >> { %s1484_s4 = smov (%p668_p12, %s667_s4), 0  ;;  %659 = sbr.rel (!%p656_p13) target bundleno = 275 (0x113), region = 124 }
 0x117   : >> { %s943_s6 = sshll.u32 %s1484_s4, 3  ;;  %s1226_s9 = smov %s1484_s4  }
 0x118   : >> { %s672_s20 = scalar_lea.vmem %s1420_s23, %s943_s6 [#allocation2]   ;;  %s673_s14 = scalar_lea.vmem %s1431_s27, %s943_s6  }
 0x11b PF: > { %s1447_s5 = sand.u32 1, %s1482_s12   ;;  %s957_s7 = sshll.u32 %s1437_s29, 3 }
 0x11c   : > { %s678_s8 = scalar_lea.vmem %s1420_s23, %s957_s7 [#allocation2]   ;;  %s680_s10 = scalar_lea.vmem %s1431_s27, %s957_s7  }
 0x11d   : > { %p948_p0 = scmp.le.s32.totalorder %s1447_s5, 0 }
 0x11e   : > { %s1233_s11 = smov (!%p948_p0), %s680_s10   ;;  %s1237_s17 = smov (!%p948_p0), %s678_s8  }
 0x11f   : > { %830 = sbr.rel (%p948_p0) target bundleno = 300 (0x12c), region = 129  ;;  %s1241_s19 = smov (!%p948_p0), 0  }
 0x120   : > { %s1245_s21 = smov (!%p948_p0), 0  }
 0x124 LB: >> { %v690_v59 = vld [vmem:[%s1239_s17] sm:$0xf]  ;;  %s692_s12 = sadd.s32 1, %s1243_s19  ;;  %s684_s21 = sadd.s32 1, %s1247_s21   ;;  %s1247_s21 = sphi %s1245_s21, %s684_s21   ;;  %s1243_s19 = sphi %s1241_s19, %s1242_s19   ;;  %s1239_s17 = sphi %s1237_s17, %s697_s17   ;;  %s1235_s11 = sphi %s1233_s11, %s698_s11  }
 0x125   : >> { %691 = vst [vmem:[%s1235_s11] sm:$0xf] %v690_v59  ;;  %p693_p1 = scmp.ge.s32.totalorder %s692_s12, %s1447_s5  ;;  %p683_p2 = scmp.ge.s32.totalorder %s684_s21, %s1447_s5 }
 0x127   : >> { %s1486_s12 = smov (%p693_p1, %s692_s12), 0  ;;  %686 = sbr.rel (!%p683_p2) target bundleno = 292 (0x124), region = 135 }
 0x128   : >> { %s949_s23 = sshll.u32 %s1486_s12, 2  ;;  %s1242_s19 = smov %s1486_s12  }
 0x129   : >> { %s697_s17 = scalar_lea.vmem %s678_s8, %s949_s23 [#allocation2]   ;;  %s698_s11 = scalar_lea.vmem %s680_s10, %s949_s23  }
 0x12c PF: > { %s13_s16 = sadd.s32 1, %s1215_s16   ;;  %s1475_s12 = smov %s1203_s13 }
 0x12d   : > { %p10_p3 = scmp.ge.s32.totalorder %s13_s16, 4   ;;  %s1476_s13 = smov %s1310_s22 }
 0x12e   : > { %s1477_s14 = smov %s1211_s15  ;;  %s1478_s15 = smov %s1480_s18 }
 0x12f   :  { %12 = sbr.rel (!%p10_p3) target bundleno = 3 (0x3), region = 146 }

// kernel: qnetwork_forward.6
= control target key start
LH: loop header
LB: loop body
LE: loop exit
PB: predicated region body
PF: predicated region fallthrough
CT: control target
= control target key end

     0   :  { %v626_v21 = vmov 1966171168   ;;  %v100_v23 = vlaneseq  ;;  %v627_v40 = vmov 0.0   ;;  %vm628_vm0 = vmmov 0   ;;  %s766_s1 = inlined_call_operand.vmem [shape: bf16[576,64], index: 1, kind: input, shape index: {}]   ;;  %s767_s0 = inlined_call_operand.vmem [shape: bf16[2,576], index: 0, kind: input, shape index: {}]   ;;  %s768_s2 = inlined_call_operand.vmem [shape: f32[1,64], index: 2, kind: input, shape index: {}]   ;;  %s769_s3 = inlined_call_operand.vmem [shape: bf16[2,64], index: 3, kind: output, shape index: {}]  }
   0x1   :  { %v589_v0 = vld [vmem:[%s766_s1 + $0x78] sm:$0xff]   ;;  %v593_v4 = vld [vmem:[%s766_s1 + $0x70] sm:$0xff]   ;;  %v597_v8 = vld [vmem:[%s766_s1 + $0x68] sm:$0xff]   ;;  %v98_v22 = vunpack.c.l.s4 %v626_v21  ;;  %vm355_vm1 = vcmask 523264   ;;  %vm481_vm2 = vcmask 516096  }
   0x2   :  { %v590_v1 = vld [vmem:[%s766_s1 + $0x38] sm:$0xff]   ;;  %525 = vmatprep.subr.bf16.mxu0 %v589_v0  ;;  %v594_v5 = vld [vmem:[%s766_s1 + $0x30] sm:$0xff]   ;;  %v598_v9 = vld [vmem:[%s766_s1 + $0x28] sm:$0xff]   ;;  %v101_v29 = vshrl.u32 %v100_v23, 7 }
   0x3   :  { %v591_v2 = vld [vmem:[%s766_s1 + $0xf8] sm:$0xff]   ;;  %526 = vmatpush3.bf16.msra.mxu0 %v590_v1  ;;  %v595_v6 = vld [vmem:[%s766_s1 + $0xf0] sm:$0xff]   ;;  %v599_v10 = vld [vmem:[%s766_s1 + $0xe8] sm:$0xff]   ;;  %v99_v28 = vunpack.c.0.s8 %v98_v22 }
   0x4   :  { %v592_v3 = vld [vmem:[%s766_s1 + $0xb8] sm:$0xff]   ;;  %547 = vmatprep.subr.bf16.mxu1 %v591_v2  ;;  %527 = vmatprep.subr.bf16.mxu0 %v593_v4  ;;  %v596_v7 = vld [vmem:[%s766_s1 + $0xb0] sm:$0xff]   ;;  %v600_v11 = vld [vmem:[%s766_s1 + $0xa8] sm:$0xff]  }
   0x5   :  { %548 = vmatpush3.bf16.msra.mxu1 %v592_v3  ;;  %v601_v12 = vld [vmem:[%s766_s1 + $0x60] sm:$0xff]   ;;  %v605_v16 = vld [vmem:[%s766_s1 + $0x58] sm:$0xff]   ;;  %v609_v20 = vld [vmem:[%s766_s1 + $0x50] sm:$0xff]   ;;  %v102_v34 = vsub.s32 %v99_v28, %v101_v29 }
   0x6   :  { %549 = vmatprep.subr.bf16.mxu1 %v595_v6  ;;  %v602_v13 = vld [vmem:[%s766_s1 + $0x20] sm:$0xff]   ;;  %v606_v17 = vld [vmem:[%s766_s1 + $0x18] sm:$0xff]   ;;  %v610_v24 = vld [vmem:[%s766_s1 + $0x10] sm:$0xff]  }
   0x7   :  { %528 = vmatpush3.bf16.msra.mxu0 %v594_v5  ;;  %v603_v14 = vld [vmem:[%s766_s1 + $0xe0] sm:$0xff]   ;;  %v607_v18 = vld [vmem:[%s766_s1 + $0xd8] sm:$0xff]   ;;  %v611_v25 = vld [vmem:[%s766_s1 + $0xd0] sm:$0xff]  }
   0x8   :  { %529 = vmatprep.subr.bf16.mxu0 %v597_v8  ;;  %v604_v15 = vld [vmem:[%s766_s1 + $0xa0] sm:$0xff]   ;;  %v608_v19 = vld [vmem:[%s766_s1 + $0x98] sm:$0xff]   ;;  %v612_v26 = vld [vmem:[%s766_s1 + $0x90] sm:$0xff]  }
   0x9   :  { %550 = vmatpush3.bf16.msra.mxu1 %v596_v7  ;;  %v613_v27 = vld [vmem:[%s766_s1 + $0x48] sm:$0xff]   ;;  %v617_v33 = vld [vmem:[%s766_s1 + $0x40] sm:$0xff]   ;;  %v622_v44 = vld [vmem:[%s766_s1 + $0x118] sm:$0xff]  }
   0xa   :  { %551 = vmatprep.subr.bf16.mxu1 %v599_v10  ;;  %v614_v30 = vld [vmem:[%s766_s1 + $0x8] sm:$0xff]   ;;  %v618_v35 = vld [vmem:[%s766_s1] sm:$0xff]   ;;  %v623_v47 = vld [vmem:[%s766_s1 + $0x110] sm:$0xff]  }
   0xb   :  { %530 = vmatpush3.bf16.msra.mxu0 %v598_v9  ;;  %v615_v31 = vld [vmem:[%s766_s1 + $0xc8] sm:$0xff]   ;;  %v619_v36 = vld [vmem:[%s766_s1 + $0xc0] sm:$0xff]  }
   0xc   :  { %531 = vmatprep.subr.bf16.mxu0 %v601_v12  ;;  %v616_v32 = vld [vmem:[%s766_s1 + $0x88] sm:$0xff]   ;;  %v15_v37 = vld [vmem:[%s767_s0] sm:$0x1f] }
   0xd   :  { %552 = vmatpush3.bf16.msra.mxu1 %v600_v11  ;;  %v103_v38 = vrot.slane %v15_v37, %v102_v34  ;;  %v621_v39 = vld [vmem:[%s766_s1 + $0x80] sm:$0xff]   ;;  %v96_v48 = vcombine.high %v15_v37, %v15_v37  ;;  %v624_v49 = vld [vmem:[%s766_s1 + $0x108] sm:$0xff]  }
   0xe   :  { %553 = vmatprep.subr.bf16.mxu1 %v603_v14  ;;  %v625_v51 = vld [vmem:[%s766_s1 + $0x100] sm:$0xff]  }
   0xf   :  { %532 = vmatpush3.bf16.msra.mxu0 %v602_v13  ;;  %v111_v41 = vcombine.high %v103_v38, %v103_v38  ;;  %v118_v42 = vrot.slane %v103_v38, %v102_v34  ;;  %v110_v50 = vrot.slane %v96_v48, %v102_v34  ;;  %v487_v61 = vld [vmem:[%s768_s2] ss:$0 sm:$0xff] }
  0x10   :  { %533 = vmatprep.subr.bf16.mxu0 %v605_v16 }
  0x11   :  { %554 = vmatpush3.bf16.msra.mxu1 %v604_v15  ;;  %v132_v43 = vrot.slane %v111_v41, %v102_v34  ;;  %v133_v45 = vcombine.high %v118_v42, %v118_v42  ;;  %v125_v52 = vrot.slane %v110_v50, %v102_v34 }
  0x12   :  { %555 = vmatprep.subr.bf16.mxu1 %v607_v18 }
  0x13   :  { %534 = vmatpush3.bf16.msra.mxu0 %v606_v17  ;;  %391 = vmatprep.mubr.bf16.mxu0 %v132_v43  ;;  %v134_v46 = vcombine.high %v132_v43, %v132_v43 }
  0x14   :  { %535 = vmatprep.subr.bf16.mxu0 %v609_v20 }
  0x15   :  { %556 = vmatpush3.bf16.msra.mxu1 %v608_v19  ;;  %431 = vmatprep.mubr.bf16.mxu1 %v134_v46 }
  0x16   :  { %557 = vmatprep.subr.bf16.mxu1 %v611_v25 }
  0x17   :  { %536 = vmatpush3.bf16.msra.mxu0 %v610_v24 }
  0x18   :  { %537 = vmatprep.subr.bf16.mxu0 %v613_v27 }
  0x19   :  { %558 = vmatpush3.bf16.msra.mxu1 %v612_v26 }
  0x1a   :  { %559 = vmatprep.subr.bf16.mxu1 %v615_v31 }
  0x1b   :  { %538 = vmatpush3.bf16.msra.mxu0 %v614_v30 }
  0x1c   :  { %539 = vmatprep.subr.bf16.mxu0 %v617_v33 }
  0x1d   :  { %560 = vmatpush3.bf16.msra.mxu1 %v616_v32 }
  0x1e   :  { %561 = vmatprep.subr.bf16.mxu1 %v619_v36 }
  0x1f   :  { %540 = vmatpush3.bf16.msra.mxu0 %v618_v35 }
  0x20   :  { %574 = vmatprep.subr.bf16.mxu0 %v627_v40 }
  0x21   :  { %562 = vmatpush3.bf16.msra.mxu1 %v621_v39 }
  0x22   :  { %392 = vmatmul.mubr.bf16.vlgmr.msra.gmra.mxu0 %v118_v42 }
  0x23   :  { %575 = vmatpush3.bf16.msra.mxu0 %v622_v44  ;;  %582 = vmatprep.mubr.msk.bf16.mxu0 %vm628_vm0, %v627_v40 }
  0x24   :  { %432 = vmatmul.mubr.bf16.vlgmr.msra.gmra.mxu1 %v133_v45  ;;  %576 = vmatprep.subr.bf16.mxu0 %v627_v40 }
  0x27   :  { %577 = vmatpush3.bf16.msra.mxu0 %v623_v47 }
  0x28   :  { %578 = vmatprep.subr.bf16.mxu0 %v627_v40 }
  0x2b   :  { %579 = vmatpush3.bf16.msra.mxu0 %v624_v49 }
  0x2c   :  { %580 = vmatprep.subr.bf16.mxu0 %v627_v40 }
  0x2f   :  { %581 = vmatpush3.bf16.msra.mxu0 %v625_v51 }
  0x32   :  { %583 = vmatmul.mubr.msk.bf16.vlgmr.msra.gmra.mxu0 %vm355_vm1, %v125_v52 }
  0xe2   :  { %v541_v53 = vpop.f32.mrf.mxu0 }
  0xe4   :  { %v542_v54 = vpop.f32.mrf.mxu0  ;;  %v563_v55 = vpop.f32.mrf.mxu1 }
  0xe5   :  { %v543_v60 = vadd.f32 %v542_v54, %v541_v53 }
  0xe6   :  { %v544_v56 = vpop.f32.mrf.mxu0  ;;  %v564_v57 = vpop.f32.mrf.mxu1 }
  0xe7   :  { %v394_v63 = vadd.f32 %v543_v60, %v487_v61  ;;  %v565_v0 = vadd.f32 %v564_v57, %v563_v55 }
  0xe8   :  { %v545_v58 = vpop.f32.mrf.mxu0  ;;  %v566_v59 = vpop.f32.mrf.mxu1 }
  0xe9   :  { %v434_v1 = vadd.f32 %v565_v0, %v394_v63 }
  0xea   :  { %v567_v62 = vpop.f32.mrf.mxu1 }
  0xf2   :  { %v473_v2 = vpop.f32.mrf.mxu0 }
  0xf3   :  { %v474_v3 = vadd.f32 %v473_v2, %v434_v1 }
  0xf4   :  { %v584_v4 = vpop.f32.mrf.mxu0 }
  0xf5   :  { %v479_v5 = vmax.f32 %v474_v3, 0.0 }
  0xf6   :  { %v476_v6 = vpop.f32.mrf.mxu0 }
  0xf7   :  { %v480_v7 = vpack.c.bf16 %v479_v5, %v479_v5 }
  0xf8   :  { %v585_v8 = vpop.f32.mrf.mxu0 }
  0xf9   :  { %482 = vst.msk [vmem:[%s769_s3] sm:$0x1] %vm481_vm2, %v480_v7 }

// kernel: qnetwork_forward.7
= control target key start
LH: loop header
LB: loop body
LE: loop exit
PB: predicated region body
PF: predicated region fallthrough
CT: control target
= control target key end

     0   :  { %v769_v2 = vmov 0   ;;  %vm141_vm0 = vcmask 523264   ;;  %s957_s0 = inlined_call_operand.vmem [shape: bf16[2,64], index: 0, kind: input, shape index: {}]   ;;  %s958_s1 = inlined_call_operand.vmem [shape: bf16[64,512], index: 1, kind: input, shape index: {}]   ;;  %s959_s2 = inlined_call_operand.vmem [shape: f32[1,512], index: 2, kind: input, shape index: {}]   ;;  %s960_s3 = inlined_call_operand.vmem [shape: bf16[512,6], index: 3, kind: input, shape index: {}]   ;;  %s961_s4 = inlined_call_operand.vmem [shape: f32[1,6], index: 4, kind: input, shape index: {}]   ;;  %s962_s5 = inlined_call_operand.hbm [shape: f32[2,6], index: 5, kind: output, shape index: {}]  }
   0x1   :  { %v691_v0 = vld [vmem:[%s958_s1 + $0x64] ss:$16 sps:$4 sm:$0xff]   ;;  %v693_v1 = vld [vmem:[%s958_s1 + $0x6c] ss:$16 sps:$4 sm:$0xff]   ;;  %177 = vmatprep.mubr.bf16.mxu0 %v769_v2  ;;  %218 = vmatprep.mubr.bf16.mxu1 %v769_v2  ;;  %v695_v3 = vld [vmem:[%s958_s1 + $0x60] ss:$16 sps:$4 sm:$0xff]  }
   0x2   :  { %153 = vmatprep.subr.bf16.mxu0 %v691_v0  ;;  %v696_v4 = vld [vmem:[%s958_s1 + $0x68] ss:$16 sps:$4 sm:$0xff]   ;;  %194 = vmatprep.subr.bf16.mxu1 %v693_v1  ;;  %v697_v5 = vld [vmem:[%s958_s1 + $0x44] ss:$16 sps:$4 sm:$0xff]   ;;  %v699_v6 = vld [vmem:[%s958_s1 + $0x4c] ss:$16 sps:$4 sm:$0xff]  }
   0x3   :  { %154 = vmatpush1.bf16.msra.mxu0 %v695_v3  ;;  %195 = vmatpush1.bf16.msra.mxu1 %v696_v4  ;;  %v701_v7 = vld [vmem:[%s958_s1 + $0x40] ss:$16 sps:$4 sm:$0xff]   ;;  %v702_v8 = vld [vmem:[%s958_s1 + $0x48] ss:$16 sps:$4 sm:$0xff]   ;;  %v703_v9 = vld [vmem:[%s958_s1 + $0x24] ss:$16 sps:$4 sm:$0xff]  }
   0x4   :  { %155 = vmatprep.subr.bf16.mxu0 %v697_v5  ;;  %196 = vmatprep.subr.bf16.mxu1 %v699_v6  ;;  %v705_v10 = vld [vmem:[%s958_s1 + $0x2c] ss:$16 sps:$4 sm:$0xff]   ;;  %v707_v11 = vld [vmem:[%s958_s1 + $0x20] ss:$16 sps:$4 sm:$0xff]   ;;  %v708_v12 = vld [vmem:[%s958_s1 + $0x28] ss:$16 sps:$4 sm:$0xff]  }
   0x5   :  { %v709_v13 = vld [vmem:[%s958_s1 + $0x4] ss:$16 sps:$4 sm:$0xff]   ;;  %v711_v14 = vld [vmem:[%s958_s1 + $0xc] ss:$16 sps:$4 sm:$0xff]   ;;  %v713_v15 = vld [vmem:[%s958_s1] ss:$16 sps:$4 sm:$0xff]  }
   0x6   :  { %v714_v16 = vld [vmem:[%s958_s1 + $0x8] ss:$16 sps:$4 sm:$0xff]   ;;  %v22_v19 = vld [vmem:[%s957_s0] sm:$0x1]  ;;  %v719_v22 = vld [vmem:[%s960_s3 + $0x70] sm:$0xff]  }
   0x7   :  { %156 = vmatpush1.bf16.msra.mxu0 %v701_v7  ;;  %197 = vmatpush1.bf16.msra.mxu1 %v702_v8  ;;  %v715_v17 = vld [vmem:[%s960_s3 + $0x78] sm:$0xff]   ;;  %v720_v23 = vld [vmem:[%s960_s3 + $0xf0] sm:$0xff]   ;;  %v723_v26 = vld [vmem:[%s960_s3 + $0x68] sm:$0xff]  }
   0x8   :  { %157 = vmatprep.subr.bf16.mxu0 %v703_v9  ;;  %198 = vmatprep.subr.bf16.mxu1 %v705_v10  ;;  %v716_v18 = vld [vmem:[%s960_s3 + $0xf8] sm:$0xff]   ;;  %v721_v24 = vld [vmem:[%s960_s3 + $0x30] sm:$0xff]   ;;  %v724_v27 = vld [vmem:[%s960_s3 + $0xe8] sm:$0xff]  }
   0x9   :  { %v717_v20 = vld [vmem:[%s960_s3 + $0x38] sm:$0xff]   ;;  %v722_v25 = vld [vmem:[%s960_s3 + $0xb0] sm:$0xff]   ;;  %v725_v28 = vld [vmem:[%s960_s3 + $0x28] sm:$0xff]  }
   0xa   :  { %v718_v21 = vld [vmem:[%s960_s3 + $0xb8] sm:$0xff]   ;;  %v726_v29 = vld [vmem:[%s960_s3 + $0xa8] sm:$0xff]   ;;  %v727_v30 = vld [vmem:[%s960_s3 + $0x60] sm:$0xff]  }
   0xb   :  { %158 = vmatpush1.bf16.msra.mxu0 %v707_v11  ;;  %199 = vmatpush1.bf16.msra.mxu1 %v708_v12  ;;  %v728_v31 = vld [vmem:[%s960_s3 + $0xe0] sm:$0xff]   ;;  %v731_v34 = vld [vmem:[%s960_s3 + $0x58] sm:$0xff]   ;;  %v735_v38 = vld [vmem:[%s960_s3 + $0x50] sm:$0xff]  }
   0xc   :  { %159 = vmatprep.subr.bf16.mxu0 %v709_v13  ;;  %200 = vmatprep.subr.bf16.mxu1 %v711_v14  ;;  %v729_v32 = vld [vmem:[%s960_s3 + $0x20] sm:$0xff]   ;;  %v732_v35 = vld [vmem:[%s960_s3 + $0xd8] sm:$0xff]   ;;  %v736_v39 = vld [vmem:[%s960_s3 + $0xd0] sm:$0xff]  }
   0xd   :  { %v730_v33 = vld [vmem:[%s960_s3 + $0xa0] sm:$0xff]   ;;  %v733_v36 = vld [vmem:[%s960_s3 + $0x18] sm:$0xff]   ;;  %v737_v40 = vld [vmem:[%s960_s3 + $0x10] sm:$0xff]  }
   0xe   :  { %v734_v37 = vld [vmem:[%s960_s3 + $0x98] sm:$0xff]   ;;  %v738_v41 = vld [vmem:[%s960_s3 + $0x90] sm:$0xff]  }
   0xf   :  { %160 = vmatpush1.bf16.msra.mxu0 %v713_v15  ;;  %201 = vmatpush1.bf16.msra.mxu1 %v714_v16 }
  0x10   :  { %645 = vmatprep.subr.bf16.mxu0 %v715_v17  ;;  %667 = vmatprep.subr.bf16.mxu1 %v716_v18 }
  0x12   :  { %610 = vmatmul.mubr.msk.bf16.vlgmr.msra.gmra.mxu0 %vm141_vm0, %v22_v19  ;;  %611 = vmatmul.mubr.msk.bf16.vlgmr.msra.gmra.mxu1 %vm141_vm0, %v22_v19 }
  0x13   :  { %646 = vmatpush3.bf16.msra.mxu0 %v717_v20  ;;  %668 = vmatpush3.bf16.msra.mxu1 %v718_v21 }
  0x14   :  { %647 = vmatprep.subr.bf16.mxu0 %v719_v22  ;;  %669 = vmatprep.subr.bf16.mxu1 %v720_v23 }
  0x17   :  { %648 = vmatpush3.bf16.msra.mxu0 %v721_v24  ;;  %670 = vmatpush3.bf16.msra.mxu1 %v722_v25 }
  0x18   :  { %649 = vmatprep.subr.bf16.mxu0 %v723_v26  ;;  %671 = vmatprep.subr.bf16.mxu1 %v724_v27 }
  0x1b   :  { %650 = vmatpush3.bf16.msra.mxu0 %v725_v28  ;;  %672 = vmatpush3.bf16.msra.mxu1 %v726_v29 }
  0x1c   :  { %651 = vmatprep.subr.bf16.mxu0 %v727_v30  ;;  %673 = vmatprep.subr.bf16.mxu1 %v728_v31 }
  0x1f   :  { %652 = vmatpush3.bf16.msra.mxu0 %v729_v32  ;;  %674 = vmatpush3.bf16.msra.mxu1 %v730_v33 }
  0x20   :  { %653 = vmatprep.subr.bf16.mxu0 %v731_v34  ;;  %675 = vmatprep.subr.bf16.mxu1 %v732_v35 }
  0x23   :  { %654 = vmatpush3.bf16.msra.mxu0 %v733_v36  ;;  %676 = vmatpush3.bf16.msra.mxu1 %v734_v37 }
  0x24   :  { %655 = vmatprep.subr.bf16.mxu0 %v735_v38  ;;  %677 = vmatprep.subr.bf16.mxu1 %v736_v39 }
  0x27   :  { %656 = vmatpush3.bf16.msra.mxu0 %v737_v40  ;;  %678 = vmatpush3.bf16.msra.mxu1 %v738_v41 }
  0x28   :  { %10 = vsyncpa [#allocation3], 0  ;;  %v739_v42 = vld [vmem:[%s960_s3 + $0x48] sm:$0xff]   ;;  %v743_v46 = vld [vmem:[%s960_s3 + $0x40] sm:$0xff]   ;;  %v41_v50 = vlaneseq  ;;  %s770_s0 = smov [#allocation2]   ;;  %vm578_vm1 = vcmask 41984  }
  0x29   :  { %v740_v43 = vld [vmem:[%s960_s3 + $0xc8] sm:$0xff]   ;;  %657 = vmatprep.subr.bf16.mxu0 %v739_v42  ;;  %v744_v47 = vld [vmem:[%s960_s3 + $0xc0] sm:$0xff]   ;;  %s586_s13 = sshll.u32 %s770_s0, 4  ;;  %s587_s13 = int_to_ptr.vmem [resolvable:$true] %s586_s13 }
  0x2a   :  { %v741_v44 = vld [vmem:[%s960_s3 + $0x8] sm:$0xff]   ;;  %679 = vmatprep.subr.bf16.mxu1 %v740_v43  ;;  %v745_v48 = vld [vmem:[%s960_s3] sm:$0xff]   ;;  %v42_v51 = vshrl.u32 %v41_v50, 7  ;;  %s747_s14 = scalar_lea.vmem %s587_s13, 32  ;;  %p752_p1 = scmp.lt.s32.totalorder %s587_s13, %s587_s13 }
  0x2b   :  { %v742_v45 = vld [vmem:[%s960_s3 + $0x88] sm:$0xff]   ;;  %658 = vmatpush3.bf16.msra.mxu0 %v741_v44  ;;  %v746_v49 = vld [vmem:[%s960_s3 + $0x80] sm:$0xff]   ;;  %p748_p0 = scmp.ne.s32.totalorder %s587_s13, %s747_s14  ;;  %p753_p2 = scmp.lt.s32.totalorder %s747_s14, %s747_s14 }
  0x2c   :  { %680 = vmatpush3.bf16.msra.mxu1 %v742_v45  ;;  %659 = vmatprep.subr.bf16.mxu0 %v743_v46  ;;  %v43_v52 = vsub.s32 0, %v42_v51  ;;  %v51_v53 = vsub.s32 2, %v42_v51  ;;  %v39_v54 = vld [vmem:[%s959_s2] sm:$0xf]  ;;  %v47_v55 = vsub.s32 1, %v42_v51  ;;  %v55_v56 = vsub.s32 3, %v42_v51 }
  0x2d   :  { %681 = vmatprep.subr.bf16.mxu1 %v744_v47  ;;  %v612_v19 = vld [vmem:[%s961_s4] ss:$0 sm:$0xff]  ;;  %p754_p3 = por %p753_p2, %p752_p1 }
  0x2e   :  { %v44_v57 = vrot.slane %v39_v54, %v43_v52  ;;  %v52_v58 = vrot.slane %v39_v54, %v51_v53  ;;  %v48_v59 = vrot.slane %v39_v54, %v47_v55  ;;  %v56_v60 = vrot.slane %v39_v54, %v55_v56 }
  0x2f   :  { %660 = vmatpush3.bf16.msra.mxu0 %v745_v48  ;;  %p755_p4 = pnand %p754_p3, %p748_p0 }
  0x30   :  { %682 = vmatpush3.bf16.msra.mxu1 %v746_v49 }
  0xd2   :  { %v179_v61 = vpop.f32.mrf.mxu0  ;;  %v220_v62 = vpop.f32.mrf.mxu1 }
  0xd3   :  { %v180_v63 = vadd.f32 %v179_v61, %v44_v57  ;;  %v221_v0 = vadd.f32 %v220_v62, %v52_v58 }
  0xd4   :  { %v181_v1 = vpop.f32.mrf.mxu0  ;;  %v222_v2 = vpop.f32.mrf.mxu1 }
  0xd5   :  { %v229_v3 = vmax.f32 %v221_v0, 0.0  ;;  %v182_v4 = vadd.f32 %v181_v1, %v48_v59  ;;  %v223_v5 = vadd.f32 %v222_v2, %v56_v60  ;;  %v227_v6 = vmax.f32 %v180_v63, 0.0 }
  0xd6   :  { %v183_v7 = vpop.f32.mrf.mxu0  ;;  %v224_v8 = vpop.f32.mrf.mxu1 }
  0xd7   :  { %v228_v9 = vmax.f32 %v182_v4, 0.0  ;;  %v230_v10 = vmax.f32 %v223_v5, 0.0  ;;  %v233_v11 = vpack.c.bf16 %v229_v3, %v229_v3  ;;  %v231_v16 = vpack.c.bf16 %v227_v6, %v227_v6 }
  0xd8   :  { %v184_v12 = vpop.f32.mrf.mxu0  ;;  %v225_v13 = vpop.f32.mrf.mxu1 }
  0xd9   :  { %v232_v14 = vpack.c.bf16 %v228_v9, %v228_v9  ;;  %v234_v15 = vpack.c.bf16 %v230_v10, %v230_v10 }
  0xdb   :  { %530 = vmatprep.mubr.bf16.mxu0 %v232_v14  ;;  %570 = vmatprep.mubr.bf16.mxu1 %v234_v15 }
  0xdc   :  { %531 = vmatmul.mubr.bf16.vlgmr.msra.gmra.mxu0 %v231_v16  ;;  %571 = vmatmul.mubr.bf16.vlgmr.msra.gmra.mxu1 %v233_v11 }
 0x19c   :  { %v661_v17 = vpop.f32.mrf.mxu0  ;;  %v683_v18 = vpop.f32.mrf.mxu1 }
 0x19e   :  { %v662_v20 = vpop.f32.mrf.mxu0  ;;  %v684_v21 = vpop.f32.mrf.mxu1 }
 0x19f   :  { %v663_v22 = vadd.f32 %v662_v20, %v661_v17  ;;  %v685_v26 = vadd.f32 %v684_v21, %v683_v18 }
 0x1a0   :  { %v664_v23 = vpop.f32.mrf.mxu0  ;;  %v686_v24 = vpop.f32.mrf.mxu1 }
 0x1a1   :  { %v533_v25 = vadd.f32 %v663_v22, %v612_v19 }
 0x1a2   :  { %v665_v27 = vpop.f32.mrf.mxu0  ;;  %v687_v28 = vpop.f32.mrf.mxu1 }
 0x1a3   :  { %v573_v29 = vadd.f32 %v685_v26, %v533_v25 }
 0x1a5   :  { %579 = vst.msk [vmem:[#allocation2] sm:$0x3] %vm578_vm1, %v573_v29 }
 0x1a6   :  { %758 = shalt.err (!%p755_p4)
}
 0x1a7   :  { %589 = dma.vmem_to_hbm [thread:$0]  %s587_s13, 32, %s962_s5, [#allocation3]  }
 0x1a8   :  { %767 = dma.done.wait [#allocation3], 32  }
 0x1a9   :  { %768 = vsyncadd [#allocation3], 4294967264 }
 0x1aa   :  { %593 = vsyncpa [#allocation3], 1 }

</bundles_post_ra>
